<compile_context>
chip_gen: v5e
topology: v5e:2x2
jax: 0.10.0
libtpu: 0.0.40
codegen_flags: <defaults>
</compile_context>

<pallas_src>
import jax
import jax.numpy as jnp
from jax import lax
from jax.experimental import pallas as pl
from jax.experimental.pallas import tpu as pltpu

_LANE = 128


def _round_up(n, m):
    return (n + m - 1) // m * m


def _mlp_kernel(x_ref, w1_ref, b1_ref, w2_ref, b2_ref, w3_ref, b3_ref, o_ref):
    """One batch tile; activations live as (features, TILE_B) => lane-dense VPU/EUP."""
    x = x_ref[...]                                        # (TILE_B, 13)

    # Layer 1: Linear(13, 32) -> (32, TILE_B) = W1 @ x^T (contract last dims of both,
    # same pattern as q @ k.T, so no explicit transpose of x is needed).
    h1 = lax.dot_general(
        w1_ref[...], x, (((1,), (1,)), ((), ())),
        preferred_element_type=jnp.float32) + b1_ref[...]
    h1 = jnp.where(h1 >= 0.0, h1, 0.01 * h1)              # LeakyReLU, slope 0.01

    # Layer 2: Linear(32, 4) + Tanh -> (4, TILE_B); tanh runs lane-dense on the EUP.
    h2 = jnp.dot(w2_ref[...], h1,
                 preferred_element_type=jnp.float32) + b2_ref[...]
    h2 = jnp.tanh(h2)

    # Layer 3: Linear(4, 1) as VPU scalar FMAs (MXU would be <2% utilized here).
    out = (w3_ref[0] * h2[0:1, :] + w3_ref[1] * h2[1:2, :]
           + w3_ref[2] * h2[2:3, :] + w3_ref[3] * h2[3:4, :] + b3_ref[0])

    o_ref[0] = out.astype(o_ref.dtype)                    # lane-dense (1, TILE_B) store


def _vmem_capacity_bytes():
    try:
        return int(pltpu.get_tpu_info().vmem_capacity_bytes)
    except Exception:
        return 64 << 20        # conservative fallback (v7x per-TensorCore VMEM)


def _vmem_budget(x_itemsize):
    """Max batch rows per tile and the scoped-VMEM limit to request.

    Lane-padded VMEM cost per batch row:
      x block:   2 (double buffer) * 128 lanes * itemsize
      out block: 2 * 8 sublanes * 4 B
      h1/h2/temporaries: ~384 B headroom
    """
    vmem_cap = _vmem_capacity_bytes()
    vmem_limit = min(vmem_cap * 7 // 8, 112 << 20)    # ~56 MiB v7x, ~112 MiB v5e/v6e
    per_row = 2 * _LANE * x_itemsize + 2 * 8 * 4 + 384
    cap_rows = max(_LANE, (vmem_limit - (4 << 20)) // per_row // _LANE * _LANE)
    return cap_rows, int(vmem_limit)


def regression_forward(x, params, *, tile_b=None, use_bf16=False):
    """x: (B, 13) float32. Returns (B, 1) float32.

    use_bf16: stream x / w1 as bfloat16 (x is >90% of HBM bytes). Numerics-visible,
    so opt-in; accumulation stays float32.
    """
    w1, b1 = params["w1"], params["b1"]                   # (32, 13), (32, 1)
    w2, b2 = params["w2"], params["b2"]                   # (4, 32),  (4, 1)
    w3, b3 = params["w3"], params["b3"]                   # (4,),     (1,)

    B = x.shape[0]
    in_dtype = jnp.bfloat16 if use_bf16 else x.dtype
    itemsize = jnp.dtype(in_dtype).itemsize

    cap_rows, vmem_limit = _vmem_budget(itemsize)
    if tile_b is None:
        # <=64k rows (step overhead already <1% there); >=4 tiles for large batches
        # so both v7x TensorCores stream; never above the VMEM-derived cap.
        tile_b = min(cap_rows, 64 * 1024, _round_up(pl.cdiv(max(B, 1), 4), _LANE))
    tile_b = max(_LANE, min(_round_up(int(tile_b), _LANE), cap_rows))

    # Only tiny batches get physically padded (<=127 rows); larger non-aligned
    # batches use a ragged last tile instead of a full-array jnp.pad HBM copy.
    if B < tile_b:
        x = jnp.pad(x, ((0, tile_b - B), (0, 0)))
    b_padded = x.shape[0]
    num_tiles = pl.cdiv(b_padded, tile_b)

    if use_bf16:
        x = x.astype(jnp.bfloat16)
        w1 = w1.astype(jnp.bfloat16)

    full = lambda a: pl.BlockSpec(a.shape, lambda i: (0,) * a.ndim)
    smem = pl.BlockSpec(memory_space=pltpu.MemorySpace.SMEM)

    cost = pl.CostEstimate(
        flops=2 * (13 * 32 + 32 * 4 + 4) * b_padded,
        transcendentals=4 * b_padded,
        bytes_accessed=(13 * itemsize + 4) * b_padded,
    )

    out = pl.pallas_call(
        _mlp_kernel,
        out_shape=jax.ShapeDtypeStruct((num_tiles, 1, tile_b), jnp.float32),
        grid=(num_tiles,),
        in_specs=[
            pl.BlockSpec((tile_b, 13), lambda i: (i, 0)),  # x: streamed along batch
            full(w1), full(b1), full(w2), full(b2),        # weights resident in VMEM
            smem, smem,                                    # w3, b3 scalars in SMEM
        ],
        out_specs=pl.BlockSpec((1, 1, tile_b), lambda i: (i, 0, 0)),
        compiler_params=pltpu.CompilerParams(
            dimension_semantics=("parallel",),             # megacore sharding on v7x
            vmem_limit_bytes=vmem_limit,
        ),
        cost_estimate=cost,
    )(x, w1, b1, w2, b2, w3, b3)

    return out.reshape(-1)[:B][:, None]


def init_params(key):
    """nn.Linear-style init (uniform +/- 1/sqrt(fan_in)); PyTorch orientation."""
    dims = [(13, 32), (32, 4), (4, 1)]
    params = {}
    for i, (fan_in, fan_out) in enumerate(dims, start=1):
        key, kw, kb = jax.random.split(key, 3)
        bound = 1.0 / jnp.sqrt(float(fan_in))
        params[f"w{i}"] = jax.random.uniform(
            kw, (fan_out, fan_in), jnp.float32, -bound, bound)
        params[f"b{i}"] = jax.random.uniform(
            kb, (fan_out, 1), jnp.float32, -bound, bound)
    # Layer-3 params are tiny: flatten so they ride in SMEM as scalars.
    params["w3"] = params["w3"].reshape(4)
    params["b3"] = params["b3"].reshape(1)
    return params


def _reference(x, p):
    h1 = x @ p["w1"].T + p["b1"].T
    h1 = jnp.where(h1 >= 0.0, h1, 0.01 * h1)
    h2 = jnp.tanh(h1 @ p["w2"].T + p["b2"].T)
    return h2 @ p["w3"][:, None] + p["b3"][None, :]


if __name__ == "__main__":
    key = jax.random.PRNGKey(0)
    kx1, kx2, kp = jax.random.split(key, 3)
    params = init_params(kp)

    # 1) Small batch (padded to one 128-row tile).
    x_small = jax.random.normal(kx1, (8, 13), jnp.float32)
    out_small = regression_forward(x_small, params)
    jax.block_until_ready(out_small)
    ref_small = _reference(x_small, params)
    assert out_small.shape == (8, 1), out_small.shape
    assert jnp.allclose(out_small, ref_small, atol=1e-5, rtol=1e-5), \
        float(jnp.max(jnp.abs(out_small - ref_small)))

    # 2) Non-aligned batch exercising the ragged-last-tile (no full-array pad) path.
    x_rag = jax.random.normal(kx2, (300, 13), jnp.float32)
    out_rag = regression_forward(x_rag, params, tile_b=128)
    jax.block_until_ready(out_rag)
    ref_rag = _reference(x_rag, params)
    assert out_rag.shape == (300, 1), out_rag.shape
    assert jnp.allclose(out_rag, ref_rag, atol=1e-5, rtol=1e-5), \
        float(jnp.max(jnp.abs(out_rag - ref_rag)))

    # 3) Opt-in bf16 streaming of x / w1 (halves HBM traffic; looser tolerance).
    out_bf16 = regression_forward(x_rag, params, tile_b=128, use_bf16=True)
    jax.block_until_ready(out_bf16)
    assert jnp.allclose(out_bf16, ref_rag, atol=5e-2, rtol=5e-2), \
        float(jnp.max(jnp.abs(out_bf16 - ref_rag)))

    print("KERNEL_OK")
</pallas_src>

<mosaic_0001>
module attributes {stable_mosaic.version = 11 : i64} {
  func.func @_mlp_kernel(%arg0: i32, %arg1: memref<128x13xf32, #tpu.memory_space<vmem>>, %arg2: memref<32x13xf32, #tpu.memory_space<vmem>>, %arg3: memref<32x1xf32, #tpu.memory_space<vmem>>, %arg4: memref<4x32xf32, #tpu.memory_space<vmem>>, %arg5: memref<4x1xf32, #tpu.memory_space<vmem>>, %arg6: memref<4xf32, #tpu.memory_space<smem>>, %arg7: memref<1xf32, #tpu.memory_space<smem>>, %arg8: memref<1x1x128xf32, #tpu.memory_space<vmem>>) attributes {dimension_semantics = [#tpu.dimension_semantics<parallel>], iteration_bounds = array<i64: 1>, scalar_prefetch = 0 : i64, scratch_operands = 0 : i64, tpu.core_type = #tpu.core_type<tc>, window_params = [{transform_indices = @transform_0, window_bounds = array<i64: 128, 13>}, {pipeline_mode = #tpu.pipeline_mode<synchronous>, transform_indices = @transform_1, window_bounds = array<i64: 32, 13>}, {pipeline_mode = #tpu.pipeline_mode<synchronous>, transform_indices = @transform_2, window_bounds = array<i64: 32, 1>}, {pipeline_mode = #tpu.pipeline_mode<synchronous>, transform_indices = @transform_3, window_bounds = array<i64: 4, 32>}, {pipeline_mode = #tpu.pipeline_mode<synchronous>, transform_indices = @transform_4, window_bounds = array<i64: 4, 1>}, {transform_indices = @transform_5, window_bounds = array<i64: 4>}, {transform_indices = @transform_6, window_bounds = array<i64: 1>}, {transform_indices = @transform_7, window_bounds = array<i64: 1, 1, 128>}]} {
    %c0 = arith.constant 0 : index
    %c0_0 = arith.constant 0 : index
    %0 = vector.load %arg1[%c0, %c0_0] : memref<128x13xf32, #tpu.memory_space<vmem>>, vector<128x13xf32>
    %c0_1 = arith.constant 0 : index
    %c0_2 = arith.constant 0 : index
    %1 = vector.load %arg2[%c0_1, %c0_2] : memref<32x13xf32, #tpu.memory_space<vmem>>, vector<32x13xf32>
    %cst = arith.constant dense<0.000000e+00> : vector<32x128xf32>
    %2 = tpu.matmul %1, %0, %cst {dimension_numbers = #tpu.dot_dimension_numbers<[1], [1], [0], [0], [0, 0, 1, 0], [], []>} : vector<32x13xf32>, vector<128x13xf32>, vector<32x128xf32> -> vector<32x128xf32>
    %c0_3 = arith.constant 0 : index
    %c0_4 = arith.constant 0 : index
    %3 = vector.load %arg3[%c0_3, %c0_4] : memref<32x1xf32, #tpu.memory_space<vmem>>, vector<32x1xf32>
    %4 = vector.broadcast %3 : vector<32x1xf32> to vector<32x128xf32>
    %5 = arith.addf %2, %4 : vector<32x128xf32>
    %cst_5 = arith.constant 0.000000e+00 : f32
    %6 = vector.broadcast %cst_5 : f32 to vector<32x128xf32>
    %7 = arith.cmpf oge, %5, %6 : vector<32x128xf32>
    %cst_6 = arith.constant 0.00999999977 : f32
    %8 = vector.broadcast %cst_6 : f32 to vector<32x128xf32>
    %9 = arith.mulf %8, %5 : vector<32x128xf32>
    %10 = arith.select %7, %5, %9 : vector<32x128xi1>, vector<32x128xf32>
    %c0_7 = arith.constant 0 : index
    %c0_8 = arith.constant 0 : index
    %11 = vector.load %arg4[%c0_7, %c0_8] : memref<4x32xf32, #tpu.memory_space<vmem>>, vector<4x32xf32>
    %cst_9 = arith.constant dense<0.000000e+00> : vector<4x128xf32>
    %12 = tpu.matmul %11, %10, %cst_9 {dimension_numbers = #tpu.dot_dimension_numbers<[1], [0], [0], [1], [0, 0, 1, 1], [], []>} : vector<4x32xf32>, vector<32x128xf32>, vector<4x128xf32> -> vector<4x128xf32>
    %c0_10 = arith.constant 0 : index
    %c0_11 = arith.constant 0 : index
    %13 = vector.load %arg5[%c0_10, %c0_11] : memref<4x1xf32, #tpu.memory_space<vmem>>, vector<4x1xf32>
    %14 = vector.broadcast %13 : vector<4x1xf32> to vector<4x128xf32>
    %15 = arith.addf %12, %14 : vector<4x128xf32>
    %16 = math.tanh %15 : vector<4x128xf32>
    %c0_12 = arith.constant 0 : index
    %17 = memref.load %arg6[%c0_12] : memref<4xf32, #tpu.memory_space<smem>>
    %18 = vector.extract_strided_slice %16 {offsets = [0, 0], sizes = [1, 128], strides = [1, 1]} : vector<4x128xf32> to vector<1x128xf32>
    %19 = vector.broadcast %17 : f32 to vector<1x128xf32>
    %20 = arith.mulf %19, %18 : vector<1x128xf32>
    %c1 = arith.constant 1 : index
    %21 = memref.load %arg6[%c1] : memref<4xf32, #tpu.memory_space<smem>>
    %22 = vector.extract_strided_slice %16 {offsets = [1, 0], sizes = [1, 128], strides = [1, 1]} : vector<4x128xf32> to vector<1x128xf32>
    %23 = vector.broadcast %21 : f32 to vector<1x128xf32>
    %24 = arith.mulf %23, %22 : vector<1x128xf32>
    %25 = arith.addf %20, %24 : vector<1x128xf32>
    %c2 = arith.constant 2 : index
    %26 = memref.load %arg6[%c2] : memref<4xf32, #tpu.memory_space<smem>>
    %27 = vector.extract_strided_slice %16 {offsets = [2, 0], sizes = [1, 128], strides = [1, 1]} : vector<4x128xf32> to vector<1x128xf32>
    %28 = vector.broadcast %26 : f32 to vector<1x128xf32>
    %29 = arith.mulf %28, %27 : vector<1x128xf32>
    %30 = arith.addf %25, %29 : vector<1x128xf32>
    %c3 = arith.constant 3 : index
    %31 = memref.load %arg6[%c3] : memref<4xf32, #tpu.memory_space<smem>>
    %32 = vector.extract_strided_slice %16 {offsets = [3, 0], sizes = [1, 128], strides = [1, 1]} : vector<4x128xf32> to vector<1x128xf32>
    %33 = vector.broadcast %31 : f32 to vector<1x128xf32>
    %34 = arith.mulf %33, %32 : vector<1x128xf32>
    %35 = arith.addf %30, %34 : vector<1x128xf32>
    %c0_13 = arith.constant 0 : index
    %36 = memref.load %arg7[%c0_13] : memref<1xf32, #tpu.memory_space<smem>>
    %37 = vector.broadcast %36 : f32 to vector<1x128xf32>
    %38 = arith.addf %35, %37 : vector<1x128xf32>
    %c0_14 = arith.constant 0 : index
    %c0_15 = arith.constant 0 : index
    %c0_16 = arith.constant 0 : index
    %39 = vector.load %arg8[%c0_14, %c0_15, %c0_16] : memref<1x1x128xf32, #tpu.memory_space<vmem>>, vector<1x1x128xf32>
    %40 = vector.shape_cast %39 : vector<1x1x128xf32> to vector<1x128xf32>
    %41 = vector.shape_cast %38 : vector<1x128xf32> to vector<1x1x128xf32>
    tpu.vector_store %arg8[%c0_14, %c0_15, %c0_16], %41 {strides = array<i32>} : memref<1x1x128xf32, #tpu.memory_space<vmem>>, vector<1x1x128xf32>,
    return
  }
  func.func @transform_0(%arg0: i32) -> (i32, i32) {
    %c0_i32 = arith.constant 0 : i32
    %c0_i32_0 = arith.constant 0 : i32
    return %arg0, %c0_i32 : i32, i32
  }
  func.func @transform_1(%arg0: i32) -> (i32, i32) {
    %c0_i32 = arith.constant 0 : i32
    %c0_i32_0 = arith.constant 0 : i32
    %c0_i32_1 = arith.constant 0 : i32
    return %c0_i32, %c0_i32_0 : i32, i32
  }
  func.func @transform_2(%arg0: i32) -> (i32, i32) {
    %c0_i32 = arith.constant 0 : i32
    %c0_i32_0 = arith.constant 0 : i32
    %c0_i32_1 = arith.constant 0 : i32
    return %c0_i32, %c0_i32_0 : i32, i32
  }
  func.func @transform_3(%arg0: i32) -> (i32, i32) {
    %c0_i32 = arith.constant 0 : i32
    %c0_i32_0 = arith.constant 0 : i32
    %c0_i32_1 = arith.constant 0 : i32
    return %c0_i32, %c0_i32_0 : i32, i32
  }
  func.func @transform_4(%arg0: i32) -> (i32, i32) {
    %c0_i32 = arith.constant 0 : i32
    %c0_i32_0 = arith.constant 0 : i32
    %c0_i32_1 = arith.constant 0 : i32
    return %c0_i32, %c0_i32_0 : i32, i32
  }
  func.func @transform_5(%arg0: i32) -> i32 {
    %c0_i32 = arith.constant 0 : i32
    %c0_i32_0 = arith.constant 0 : i32
    return %c0_i32 : i32
  }
  func.func @transform_6(%arg0: i32) -> i32 {
    %c0_i32 = arith.constant 0 : i32
    %c0_i32_0 = arith.constant 0 : i32
    return %c0_i32 : i32
  }
  func.func @transform_7(%arg0: i32) -> (i32, i32, i32) {
    %c0_i32 = arith.constant 0 : i32
    %c0_i32_0 = arith.constant 0 : i32
    %c0_i32_1 = arith.constant 0 : i32
    return %arg0, %c0_i32, %c0_i32_0 : i32, i32, i32
  }
}

</mosaic_0001>

<bundles_post_ra>
// kernel: tpu_custom_call.1
= control target key start
LH: loop header
LB: loop body
LE: loop exit
PB: predicated region body
PF: predicated region fallthrough
CT: control target
= control target key end

     0   :  { %13 = vsyncpa [#allocation5], 0  ;;  %s550_s0 = inlined_call_operand.vmem [shape: f32[128,13], index: 0, kind: input, shape index: {}]   ;;  %s551_s1 = inlined_call_operand.vmem [shape: f32[32,13], index: 1, kind: input, shape index: {}]   ;;  %s552_s2 = inlined_call_operand.vmem [shape: f32[32,1], index: 2, kind: input, shape index: {}]   ;;  %s553_s3 = inlined_call_operand.vmem [shape: f32[4,32], index: 3, kind: input, shape index: {}]   ;;  %s554_s4 = inlined_call_operand.vmem [shape: f32[4,1], index: 4, kind: input, shape index: {}]   ;;  %s555_s5 = inlined_call_operand.vmem [shape: f32[4], index: 5, kind: input, shape index: {}]   ;;  %s556_s6 = inlined_call_operand.<no memory space> [shape: f32[1], index: 6, kind: input, shape index: {}]   ;;  %s557_s7 = inlined_call_operand.hbm [shape: f32[1,1,128], index: 7, kind: output, shape index: {}]  }
   0x1   :  { %14 = vsyncpa [#allocation4], 0  ;;  %s30_s26 = sshll.u32 %s555_s5, 4  ;;  %s368_s27 = smov [#allocation3]   ;;  %s31_s26 = int_to_ptr.vmem [resolvable:$true] %s30_s26 }
   0x2   :  { %33 = dma.vmem_to_smem %s31_s26, 16, %s368_s27, [#allocation5]  }
   0x3   :  { %364 = dma.done.wait [#allocation5], 16  }
   0x4   :  { %365 = vsyncadd [#allocation5], 4294967280 }
   0x5   :  { %40 = sfence }
   0x6   :  { %v56_v0 = vld [vmem:[%s550_s0 + $0x78] sm:$0xff]  ;;  %vm85_vm0 = vcmask 105472   ;;  %v55_v1 = vld [vmem:[%s550_s0 + $0x70] sm:$0xff]  ;;  %v54_v2 = vld [vmem:[%s550_s0 + $0x68] sm:$0xff]  ;;  %v369_v10 = vmov 0   ;;  %vm194_vm5 = vcmask 261120  }
   0x7   :  { %289 = vmatpush.xpose.msk.msra.mxu3 %vm85_vm0, %v56_v0  ;;  %288 = vmatpush.xpose.msk.msra.mxu2 %vm85_vm0, %v56_v0  ;;  %v53_v3 = vld [vmem:[%s550_s0 + $0x60] sm:$0xff]  ;;  %v52_v4 = vld [vmem:[%s550_s0 + $0x58] sm:$0xff]  ;;  %v51_v5 = vld [vmem:[%s550_s0 + $0x50] sm:$0xff]  ;;  %s285_s28 = sld [smem:[#allocation3 + $0x1]]  ;;  %s370_s9 = smov [#allocation6]  }
   0x8   :  { %264 = vmatpush.xpose.msk.msra.mxu0 %vm85_vm0, %v56_v0  ;;  %v50_v6 = vld [vmem:[%s550_s0 + $0x48] sm:$0xff]  ;;  %v49_v7 = vld [vmem:[%s550_s0 + $0x40] sm:$0xff]  ;;  %v48_v8 = vld [vmem:[%s550_s0 + $0x38] sm:$0xff]  ;;  %323 = vset.pattern.permute.xlu0 %v369_v10  ;;  %s286_s29 = sld [smem:[#allocation3 + $0x2]]  ;;  %v244_v0 = vstv %s556_s6  ;;  %s252_s10 = sshll.u32 %s370_s9, 4  ;;  %s253_s10 = int_to_ptr.vmem [resolvable:$true] %s252_s10 }
   0x9   :  { %v47_v9 = vld [vmem:[%s550_s0 + $0x30] sm:$0xff]  ;;  %324 = vset.pattern.permute.xlu1 %v369_v10  ;;  %325 = vset.pattern.permute.xlu2 %v369_v10  ;;  %v46_v11 = vld [vmem:[%s550_s0 + $0x28] sm:$0xff]  ;;  %v64_v12 = vld [vmem:[%s552_s2 + $0x18] sm:$0xff]  ;;  %s219_s30 = sld [smem:[#allocation3]]  ;;  %s254_s13 = sshll.u32 %s557_s7, 4  ;;  %s255_s13 = int_to_ptr.hbm [resolvable:$true] %s254_s13 }
   0xa   :  { %v62_v13 = vld [vmem:[%s552_s2 + $0x8] sm:$0xff]  ;;  %v45_v14 = vld [vmem:[%s550_s0 + $0x20] sm:$0xff]  ;;  %82 = vperm.xlu0 %323, %v64_v12   ;;  %v44_v15 = vld [vmem:[%s550_s0 + $0x18] sm:$0xff]  ;;  %s287_s8 = sld [smem:[#allocation3 + $0x3]] }
   0xb   :  { %291 = vmatpush.xpose.msk.msra.mxu3 %vm85_vm0, %v55_v1  ;;  %290 = vmatpush.xpose.msk.msra.mxu2 %vm85_vm0, %v55_v1  ;;  %v63_v16 = vld [vmem:[%s552_s2 + $0x10] sm:$0xff]  ;;  %v61_v17 = vld [vmem:[%s552_s2] sm:$0xff]  ;;  %v42_v19 = vld [vmem:[%s550_s0 + $0x8] sm:$0xff] }
   0xc   :  { %265 = vmatpush.xpose.msk.msra.mxu0 %vm85_vm0, %v55_v1  ;;  %72 = vperm.xlu1 %324, %v62_v13   ;;  %v43_v18 = vld [vmem:[%s550_s0 + $0x10] sm:$0xff]  ;;  %v41_v20 = vld [vmem:[%s550_s0] sm:$0xff]  ;;  %v58_v22 = vld [vmem:[%s551_s1 + $0x8] sm:$0xff] }
   0xd   :  { %v59_v21 = vld [vmem:[%s551_s1 + $0x10] sm:$0xff]  ;;  %v57_v23 = vld [vmem:[%s551_s1] sm:$0xff]  ;;  %v60_v24 = vld [vmem:[%s551_s1 + $0x18] sm:$0xff]  ;;  %v223_v50 = vstv %s285_s28 }
   0xe   :  { %v188_v25 = vld [vmem:[%s554_s4] sm:$0xf]  ;;  %v230_v51 = vstv %s286_s29 }
   0xf   :  { %293 = vmatpush.xpose.msk.msra.mxu3 %vm85_vm0, %v54_v2  ;;  %292 = vmatpush.xpose.msk.msra.mxu2 %vm85_vm0, %v54_v2  ;;  %v187_v45 = vld [vmem:[%s553_s3] sm:$0xf]  ;;  %v220_v53 = vstv %s219_s30 }
  0x10   :  { %266 = vmatpush.xpose.msk.msra.mxu0 %vm85_vm0, %v54_v2  ;;  %191 = vperm.xlu2 %325, %v188_v25   ;;  %v237_v54 = vstv %s287_s8 }
  0x12   :  { %77 = vperm.xlu0 %323, %v63_v16  }
  0x13   :  { %295 = vmatpush.xpose.msk.msra.mxu3 %vm85_vm0, %v53_v3  ;;  %294 = vmatpush.xpose.msk.msra.mxu2 %vm85_vm0, %v53_v3 }
  0x14   :  { %267 = vmatpush.xpose.msk.msra.mxu0 %vm85_vm0, %v53_v3  ;;  %67 = vperm.xlu1 %324, %v61_v17  }
  0x17   :  { %297 = vmatpush.xpose.msk.msra.mxu3 %vm85_vm0, %v52_v4  ;;  %296 = vmatpush.xpose.msk.msra.mxu2 %vm85_vm0, %v52_v4 }
  0x18   :  { %268 = vmatpush.xpose.msk.msra.mxu0 %vm85_vm0, %v52_v4 }
  0x1b   :  { %299 = vmatpush.xpose.msk.msra.mxu3 %vm85_vm0, %v51_v5  ;;  %298 = vmatpush.xpose.msk.msra.mxu2 %vm85_vm0, %v51_v5 }
  0x1c   :  { %269 = vmatpush.xpose.msk.msra.mxu0 %vm85_vm0, %v51_v5 }
  0x1f   :  { %301 = vmatpush.xpose.msk.msra.mxu3 %vm85_vm0, %v50_v6  ;;  %300 = vmatpush.xpose.msk.msra.mxu2 %vm85_vm0, %v50_v6 }
  0x20   :  { %270 = vmatpush.xpose.msk.msra.mxu0 %vm85_vm0, %v50_v6 }
  0x23   :  { %303 = vmatpush.xpose.msk.msra.mxu3 %vm85_vm0, %v49_v7  ;;  %302 = vmatpush.xpose.msk.msra.mxu2 %vm85_vm0, %v49_v7 }
  0x24   :  { %271 = vmatpush.xpose.msk.msra.mxu0 %vm85_vm0, %v49_v7 }
  0x27   :  { %305 = vmatpush.xpose.msk.msra.mxu3 %vm85_vm0, %v48_v8  ;;  %304 = vmatpush.xpose.msk.msra.mxu2 %vm85_vm0, %v48_v8 }
  0x28   :  { %272 = vmatpush.xpose.msk.msra.mxu0 %vm85_vm0, %v48_v8 }
  0x2b   :  { %307 = vmatpush.xpose.msk.msra.mxu3 %vm85_vm0, %v47_v9  ;;  %306 = vmatpush.xpose.msk.msra.mxu2 %vm85_vm0, %v47_v9 }
  0x2c   :  { %273 = vmatpush.xpose.msk.msra.mxu0 %vm85_vm0, %v47_v9 }
  0x2f   :  { %309 = vmatpush.xpose.msk.msra.mxu3 %vm85_vm0, %v46_v11  ;;  %308 = vmatpush.xpose.msk.msra.mxu2 %vm85_vm0, %v46_v11 }
  0x30   :  { %274 = vmatpush.xpose.msk.msra.mxu0 %vm85_vm0, %v46_v11 }
  0x33   :  { %311 = vmatpush.xpose.msk.msra.mxu3 %vm85_vm0, %v45_v14  ;;  %310 = vmatpush.xpose.msk.msra.mxu2 %vm85_vm0, %v45_v14 }
  0x34   :  { %275 = vmatpush.xpose.msk.msra.mxu0 %vm85_vm0, %v45_v14 }
  0x37   :  { %313 = vmatpush.xpose.msk.msra.mxu3 %vm85_vm0, %v44_v15  ;;  %312 = vmatpush.xpose.msk.msra.mxu2 %vm85_vm0, %v44_v15 }
  0x38   :  { %276 = vmatpush.xpose.msk.msra.mxu0 %vm85_vm0, %v44_v15 }
  0x3b   :  { %315 = vmatpush.xpose.msk.msra.mxu3 %vm85_vm0, %v43_v18  ;;  %314 = vmatpush.xpose.msk.msra.mxu2 %vm85_vm0, %v43_v18 }
  0x3c   :  { %277 = vmatpush.xpose.msk.msra.mxu0 %vm85_vm0, %v43_v18 }
  0x3f   :  { %317 = vmatpush.xpose.msk.msra.mxu3 %vm85_vm0, %v42_v19  ;;  %316 = vmatpush.xpose.msk.msra.mxu2 %vm85_vm0, %v42_v19 }
  0x40   :  { %278 = vmatpush.xpose.msk.msra.mxu0 %vm85_vm0, %v42_v19 }
  0x43   :  { %319 = vmatpush.xpose.msk.msra.mxu3 %vm85_vm0, %v41_v20  ;;  %318 = vmatpush.xpose.msk.msra.mxu2 %vm85_vm0, %v41_v20 }
  0x44   :  { %279 = vmatpush.xpose.msk.msra.mxu0 %vm85_vm0, %v41_v20 }
  0x46   :  { %282 = vmatmul.msk.f32.vlgmr.msra.gmra.mxu3 %vm85_vm0, %v59_v21  ;;  %281 = vmatmul.msk.f32.vlgmr.msra.gmra.mxu2 %vm85_vm0, %v58_v22 }
  0x47   :  { %280 = vmatmul.msk.f32.vlgmr.msra.gmra.mxu0 %vm85_vm0, %v57_v23 }
  0x4e   :  { %283 = vmatmul.msk.f32.gmra.mxu3 %vm85_vm0, %v60_v24 }
  0x6a   :  { %v192_v47 = vpop.permute.xlu2 %191 }
  0x7c   :  { %v83_v26 = vpop.permute.xlu0 %82 }
  0x7e   :  { %v73_v27 = vpop.permute.xlu1 %72 }
  0x84   :  { %v78_v29 = vpop.permute.xlu0 %77 }
  0x86   :  { %v68_v32 = vpop.permute.xlu1 %67 }
  0xc4   :  { %v163_v33 = vpop.f32.mrf.mxu0 }
  0xc5   :  { %v164_v37 = vadd.f32 %v163_v33, %v68_v32 }
  0xc7   :  { %v179_v43 = vmul.f32 0.01, %v164_v37  ;;  %vm175_vm4 = vcmp.ge.f32.partialorder %v164_v37, 0.0 }
  0xc9   :  { %v169_v28 = vpop.f32.mrf.mxu3  ;;  %v166_v30 = vpop.f32.mrf.mxu2  ;;  %v183_v46 = vsel %vm175_vm4, %v164_v37, %v179_v43 }
  0xca   :  { %v170_v31 = vadd.f32 %v169_v28, %v78_v29  ;;  %v167_v35 = vadd.f32 %v166_v30, %v73_v27 }
  0xcc   :  { %v181_v39 = vmul.f32 0.01, %v170_v31  ;;  %vm177_vm2 = vcmp.ge.f32.partialorder %v170_v31, 0.0  ;;  %v180_v41 = vmul.f32 0.01, %v167_v35  ;;  %vm176_vm3 = vcmp.ge.f32.partialorder %v167_v35, 0.0 }
  0xce   :  { %v185_v42 = vsel %vm177_vm2, %v170_v31, %v181_v39  ;;  %v184_v44 = vsel %vm176_vm3, %v167_v35, %v180_v41 }
  0xd1   :  { %v172_v34 = vpop.f32.mrf.mxu3 }
  0xd2   :  { %v173_v36 = vadd.f32 %v172_v34, %v83_v26 }
  0xd4   :  { %vm178_vm1 = vcmp.ge.f32.partialorder %v173_v36, 0.0  ;;  %v182_v38 = vmul.f32 0.01, %v173_v36 }
  0xd6   :  { %v186_v40 = vsel %vm178_vm1, %v173_v36, %v182_v38 }
  0xd7   :  { %210 = vmatpush.msra.mxu1 %v186_v40 }
  0xd9   :  { %211 = vmatpush.msra.mxu1 %v185_v42 }
  0xdb   :  { %212 = vmatpush.msra.mxu1 %v184_v44 }
  0xdd   :  { %213 = vmatpush.msra.mxu1 %v183_v46 }
  0xde   :  { %284 = vmatmul.msk.f32.vlgmr.msra.gmra.mxu1 %vm194_vm5, %v187_v45 }
 0x15b   :  { %v215_v48 = vpop.f32.mrf.mxu1 }
 0x15c   :  { %v216_v49 = vadd.f32 %v215_v48, %v192_v47 }
 0x15e   :  { %326 = vtanh.f32 %v216_v49 }
 0x164   :  { %v327_v52 = vpop.eup %326 }
 0x165   :  { %v224_v55 = vmul.f32 %v327_v52, %v223_v50  ;;  %v231_v56 = vmul.f32 %v327_v52, %v230_v51  ;;  %v221_v57 = vmul.f32 %v327_v52, %v220_v53  ;;  %v238_v59 = vmul.f32 %v327_v52, %v237_v54 }
 0x167   :  { %v226_v58 = vrot.slane %v224_v55, 1  ;;  %v233_v61 = vrot.slane %v231_v56, 2  ;;  %v240_v63 = vrot.slane %v238_v59, 3 }
 0x169   :  { %v228_v60 = vadd.f32 %v226_v58, %v221_v57 }
 0x16b   :  { %v235_v62 = vadd.f32 %v233_v61, %v228_v60 }
 0x16d   :  { %v242_v1 = vadd.f32 %v240_v63, %v235_v62 }
 0x16f   :  { %v245_v2 = vadd.f32 %v244_v0, %v242_v1 }
 0x171   :  { %246 = vst [vmem:[#allocation6] sm:$0x1] %v245_v2 }
 0x172   :  { %257 = dma.vmem_to_hbm [thread:$0]  %s253_s10, 16, %s255_s13, [#allocation4]  }
 0x173   :  { %366 = dma.done.wait [#allocation4], 16  }
 0x174   :  { %367 = vsyncadd [#allocation4], 4294967280 }
 0x175   :  { %262 = vsyncpa [#allocation4], 1 }
 0x176   :  { %263 = vsyncpa [#allocation5], 1 }

</bundles_post_ra>
